<compile_context>
chip_gen: v7x
topology: tpu7x:2x2x1
jax: 0.10.0
libtpu: 0.0.40
codegen_flags: <defaults>
</compile_context>

<pallas_src>
import jax
import jax.numpy as jnp
from jax.experimental import pallas as pl
from jax.experimental.pallas import tpu as pltpu


def _round_up(v, m):
    return ((v + m - 1) // m) * m


def _convt1x1_vpu_kernel(x_ref, w_ref, b_ref, o_ref):
    # x_ref: (1, Cin, TM)   spatial positions on lanes
    # w_ref: (Cout, Cin)    0.25 scale already folded in
    # b_ref: (Cout, 1)      0.25 scale already folded in
    # o_ref: (1, Cout, TM)
    x = x_ref[0]                                           # (Cin, TM)
    w = w_ref[...]                                         # (Cout, Cin)
    acc = jnp.broadcast_to(b_ref[...], o_ref.shape[1:])    # (Cout, TM)
    for ic in range(x.shape[0]):                           # unrolled; Cin is tiny
        acc = acc + w[:, ic:ic + 1] * x[ic:ic + 1, :]      # pure-VPU outer product
    o_ref[0] = acc


def _convt1x1_mxu_kernel(x_ref, w_ref, b_ref, o_ref):
    # Used only when Cin >= 16 and Cout > 8 (real work for the MXU).
    o_ref[0] = (
        jnp.dot(w_ref[...], x_ref[0], preferred_element_type=jnp.float32)
        + b_ref[...]
    )


def conv_transpose_1x1_scale(x_nchw, weight, bias, *, scale=0.25):
    """ConvTranspose2d(k=1, s=1, p=0) + *scale via a Pallas TPU kernel.

    x_nchw: (N, Cin, H, W) float32
    weight: (Cin, Cout, 1, 1) float32   (PyTorch ConvTranspose2d weight layout)
    bias:   (Cout,) float32
    returns: (N, Cout, H, W) float32
    """
    N, Cin, H, W = x_nchw.shape
    Cout = weight.shape[1]
    M = H * W

    # Fold the scale into weight / bias once at trace time (O(Cin*Cout)).
    w_oc_ic = jnp.transpose(weight[:, :, 0, 0]).astype(jnp.float32) * jnp.float32(scale)  # (Cout, Cin)
    b_oc = (bias.astype(jnp.float32) * jnp.float32(scale))[:, None]                        # (Cout, 1)

    # NCHW is already spatial-last: reshape is layout-preserving, no transpose,
    # no pad — Pallas masks the partial final block.
    x3 = x_nchw.astype(jnp.float32).reshape(N, Cin, M)

    # Spatial (lane) tiling: big blocks to amortize per-step pipeline overhead.
    TM_MAX = 65536                       # ~8-9 MiB/step double-buffered; fits v5e/v6e/v7x
    m128 = _round_up(M, 128)
    TM = min(TM_MAX, m128)
    if N == 1 and m128 > 128 and pl.cdiv(M, TM) < 2:
        # Guarantee >= 2 parallel blocks so both v7x TensorCores / megacore
        # get work on the memory-bound path.
        TM = _round_up(pl.cdiv(m128, 2), 128)
    num_m = pl.cdiv(M, TM)

    use_mxu = (Cin >= 16) and (Cout > 8)
    kernel = _convt1x1_mxu_kernel if use_mxu else _convt1x1_vpu_kernel

    out = pl.pallas_call(
        kernel,
        out_shape=jax.ShapeDtypeStruct((N, Cout, M), jnp.float32),
        grid=(N, num_m),
        in_specs=[
            pl.BlockSpec((1, Cin, TM), lambda n, m: (n, 0, m)),
            pl.BlockSpec((Cout, Cin), lambda n, m: (0, 0)),
            pl.BlockSpec((Cout, 1), lambda n, m: (0, 0)),
        ],
        out_specs=pl.BlockSpec((1, Cout, TM), lambda n, m: (n, 0, m)),
        compiler_params=pltpu.CompilerParams(
            dimension_semantics=("parallel", "parallel"),
            vmem_limit_bytes=28 * 1024 * 1024,
        ),
    )(x3, w_oc_ic, b_oc)

    # Layout-preserving reshape back to NCHW; no slicing needed.
    return out.reshape(N, Cout, H, W)


def _reference(x, w, b, scale=0.25):
    return (
        jnp.einsum("nihw,io->nohw", x, w[:, :, 0, 0], precision="highest")
        + b[None, :, None, None]
    ) * scale


if __name__ == "__main__":
    key = jax.random.PRNGKey(0)
    k_x1, k_w, k_b, k_x2, k_x3, k_x4, k_w4, k_b4 = jax.random.split(key, 8)

    # --- primary shape implied by the PyTorch module: x1 = randn(1, 1, 2, 5)
    Cin, Cout = 1, 4
    x1 = jax.random.normal(k_x1, (1, Cin, 2, 5), dtype=jnp.float32)
    # Deterministic synthetic parameters (not a checkpoint load).
    weight = jax.random.normal(k_w, (Cin, Cout, 1, 1), dtype=jnp.float32) * 0.5
    bias = jax.random.normal(k_b, (Cout,), dtype=jnp.float32) * 0.1

    out1 = jax.block_until_ready(conv_transpose_1x1_scale(x1, weight, bias))
    assert out1.shape == (1, Cout, 2, 5), out1.shape
    assert jnp.allclose(out1, _reference(x1, weight, bias), atol=1e-5, rtol=1e-5)

    # --- batch=2, 16x16 spatial: exercises the (N, spatial) grid.
    x2 = jax.random.normal(k_x2, (2, Cin, 16, 16), dtype=jnp.float32)
    out2 = jax.block_until_ready(conv_transpose_1x1_scale(x2, weight, bias))
    assert jnp.allclose(out2, _reference(x2, weight, bias), atol=1e-5, rtol=1e-5)

    # --- N=1 with a non-multiple-of-128 spatial extent: exercises the
    #     ">=2 parallel blocks" split and the masked partial final block.
    x3 = jax.random.normal(k_x3, (1, Cin, 50, 50), dtype=jnp.float32)
    out3 = jax.block_until_ready(conv_transpose_1x1_scale(x3, weight, bias))
    assert jnp.allclose(out3, _reference(x3, weight, bias), atol=1e-5, rtol=1e-5)

    # --- deep/wide channel mix: exercises the MXU path (Cin>=16, Cout>8).
    Cin4, Cout4 = 32, 16
    x4 = jax.random.normal(k_x4, (1, Cin4, 16, 16), dtype=jnp.float32)
    w4 = jax.random.normal(k_w4, (Cin4, Cout4, 1, 1), dtype=jnp.float32) * 0.25
    b4 = jax.random.normal(k_b4, (Cout4,), dtype=jnp.float32) * 0.1
    out4 = jax.block_until_ready(conv_transpose_1x1_scale(x4, w4, b4))
    assert jnp.allclose(out4, _reference(x4, w4, b4), atol=1e-3, rtol=1e-3)

    print("KERNEL_OK")
</pallas_src>

<mosaic_0001>
module attributes {stable_mosaic.version = 11 : i64} {
  func.func @_convt1x1_vpu_kernel(%arg0: i32, %arg1: i32, %arg2: memref<1x1x128xf32, #tpu.memory_space<vmem>>, %arg3: memref<4x1xf32, #tpu.memory_space<vmem>>, %arg4: memref<4x1xf32, #tpu.memory_space<vmem>>, %arg5: memref<1x4x128xf32, #tpu.memory_space<vmem>>) attributes {dimension_semantics = [#tpu.dimension_semantics<parallel>, #tpu.dimension_semantics<parallel>], iteration_bounds = array<i64: 1, 1>, scalar_prefetch = 0 : i64, scratch_operands = 0 : i64, tpu.core_type = #tpu.core_type<tc>, window_params = [{transform_indices = @transform_0, window_bounds = array<i64: 1, 1, 128>}, {pipeline_mode = #tpu.pipeline_mode<synchronous>, transform_indices = @transform_1, window_bounds = array<i64: 4, 1>}, {pipeline_mode = #tpu.pipeline_mode<synchronous>, transform_indices = @transform_2, window_bounds = array<i64: 4, 1>}, {transform_indices = @transform_3, window_bounds = array<i64: 1, 4, 128>}]} {
    %c0 = arith.constant 0 : index
    %c0_0 = arith.constant 0 : index
    %c0_1 = arith.constant 0 : index
    %0 = vector.load %arg2[%c0, %c0_0, %c0_1] : memref<1x1x128xf32, #tpu.memory_space<vmem>>, vector<1x1x128xf32>
    %1 = vector.shape_cast %0 : vector<1x1x128xf32> to vector<1x128xf32>
    %c0_2 = arith.constant 0 : index
    %c0_3 = arith.constant 0 : index
    %2 = vector.load %arg3[%c0_2, %c0_3] : memref<4x1xf32, #tpu.memory_space<vmem>>, vector<4x1xf32>
    %c0_4 = arith.constant 0 : index
    %c0_5 = arith.constant 0 : index
    %3 = vector.load %arg4[%c0_4, %c0_5] : memref<4x1xf32, #tpu.memory_space<vmem>>, vector<4x1xf32>
    %4 = vector.shape_cast %3 : vector<4x1xf32> to vector<4x1xf32>
    %5 = vector.broadcast %4 : vector<4x1xf32> to vector<4x128xf32>
    %6 = vector.broadcast %2 : vector<4x1xf32> to vector<4x128xf32>
    %7 = vector.broadcast %1 : vector<1x128xf32> to vector<4x128xf32>
    %8 = arith.mulf %6, %7 : vector<4x128xf32>
    %9 = arith.addf %5, %8 : vector<4x128xf32>
    %c0_6 = arith.constant 0 : index
    %c0_7 = arith.constant 0 : index
    %c0_8 = arith.constant 0 : index
    %10 = vector.load %arg5[%c0_6, %c0_7, %c0_8] : memref<1x4x128xf32, #tpu.memory_space<vmem>>, vector<1x4x128xf32>
    %11 = vector.shape_cast %10 : vector<1x4x128xf32> to vector<4x128xf32>
    %12 = vector.shape_cast %9 : vector<4x128xf32> to vector<1x4x128xf32>
    tpu.vector_store %arg5[%c0_6, %c0_7, %c0_8], %12 {strides = array<i32>} : memref<1x4x128xf32, #tpu.memory_space<vmem>>, vector<1x4x128xf32>,
    return
  }
  func.func @transform_0(%arg0: i32, %arg1: i32) -> (i32, i32, i32) {
    %c0_i32 = arith.constant 0 : i32
    %c0_i32_0 = arith.constant 0 : i32
    return %arg0, %c0_i32, %arg1 : i32, i32, i32
  }
  func.func @transform_1(%arg0: i32, %arg1: i32) -> (i32, i32) {
    %c0_i32 = arith.constant 0 : i32
    %c0_i32_0 = arith.constant 0 : i32
    %c0_i32_1 = arith.constant 0 : i32
    return %c0_i32, %c0_i32_0 : i32, i32
  }
  func.func @transform_2(%arg0: i32, %arg1: i32) -> (i32, i32) {
    %c0_i32 = arith.constant 0 : i32
    %c0_i32_0 = arith.constant 0 : i32
    %c0_i32_1 = arith.constant 0 : i32
    return %c0_i32, %c0_i32_0 : i32, i32
  }
  func.func @transform_3(%arg0: i32, %arg1: i32) -> (i32, i32, i32) {
    %c0_i32 = arith.constant 0 : i32
    %c0_i32_0 = arith.constant 0 : i32
    return %arg0, %c0_i32, %arg1 : i32, i32, i32
  }
}

</mosaic_0001>

<bundles_post_ra>
// kernel: tpu_custom_call.1
= control target key start
LH: loop header
LB: loop body
LE: loop exit
PB: predicated region body
PF: predicated region fallthrough
CT: control target
= control target key end

     0   :  { %v79_v1 = vmov 0   ;;  %s122_s0 = inlined_call_operand.vmem [shape: f32[1,1,10], index: 0, kind: input, shape index: {}]   ;;  %s123_s1 = inlined_call_operand.vmem [shape: f32[4,1], index: 1, kind: input, shape index: {}]   ;;  %s124_s2 = inlined_call_operand.vmem [shape: f32[4,1], index: 2, kind: input, shape index: {}]   ;;  %s125_s3 = inlined_call_operand.hbm [shape: f32[1,4,10], index: 3, kind: output, shape index: {}]  }
   0x1   :  { %v16_v0 = vld [vmem:[%s123_s1] sm:$0xf]  ;;  %54 = vset.pattern.permute.xlu0 %v79_v1 }
   0x2   :  { %8 = vsyncpa [#allocation3], 0  ;;  %25 = vperm.xlu0 %54, %v16_v0   ;;  %v17_v2 = vld [vmem:[%s124_s2] sm:$0xf]  ;;  %s80_s18 = smov [#allocation2]  }
   0x3   :  { %v51_v4 = vld [vmem:[%s122_s0] ss:$0 sm:$0xff]  ;;  %s43_s19 = sshll.u32 %s80_s18, 4  ;;  %s44_s19 = int_to_ptr.vmem [resolvable:$true] %s43_s19 }
   0x4   :  { %s55_s1 = scalar_lea.vmem %s44_s19, 64  ;;  %p60_p1 = scmp.lt.s32.totalorder %s44_s19, %s44_s19 }
   0x5   :  { %p56_p0 = scmp.ne.s32.totalorder %s44_s19, %s55_s1  ;;  %p61_p2 = scmp.lt.s32.totalorder %s55_s1, %s55_s1 }
   0x6   :  { %20 = vperm.xlu0 %54, %v17_v2  }
   0x7   :  { %p62_p3 = por %p61_p2, %p60_p1 }
   0x9   :  { %p63_p4 = pnand %p62_p3, %p56_p0 }
  0x81   :  { %v26_v3 = vpop.permute.xlu0 %25 }
  0x82   :  { %v34_v5 = vmul.f32 %v51_v4, %v26_v3 }
  0x85   :  { %v21_v6 = vpop.permute.xlu0 %20 }
  0x86   :  { %v35_v7 = vadd.f32 %v34_v5, %v21_v6 }
  0x88   :  { %36 = vst [vmem:[#allocation2] sm:$0xf] %v35_v7 }
  0x89   :  { %66 = shalt.err (!%p63_p4)
}
  0x8a   :  { %s67_s21 = scalar_lea.hbm %s125_s3, 64 }
  0x8b   :  { %p68_p5 = scmp.ne.s32.totalorder %s125_s3, %s67_s21  ;;  %p71_p6 = scmp.lt.u32.totalorder %s67_s21, %s125_s3 }
  0x8d   :  { %p73_p7 = pnand %p71_p6, %p68_p5 }
  0x8f   :  { %76 = shalt.err (!%p73_p7)
}
  0x90   :  { %46 = dma.vmem_to_hbm [thread:$0]  %s44_s19, 64, %s125_s3, [#allocation3]  }
  0x91   :  { %77 = dma.done.wait [#allocation3], 64  }
  0x92   :  { %78 = vsyncadd [#allocation3], 4294967232 }
  0x93   :  { %50 = vsyncpa [#allocation3], 1 }

</bundles_post_ra>
